<compile_context>
chip_gen: v7x
topology: tpu7x:2x2x1
jax: 0.10.0
libtpu: 0.0.40
codegen_flags: <defaults>
</compile_context>

<pallas_src>
import jax
import jax.numpy as jnp
from jax.experimental import pallas as pl
from jax.experimental.pallas import tpu as pltpu


# --------------------------------------------------------------------------- kernel

def _ffn_kernel(x_ref, w1_ref, b1_ref, w2_ref, b2_ref, o_ref, acc_ref):
    """One (row-block, hidden-chunk) step of  y = relu(x @ W1 + b1) @ W2 + b2.

    Grid: (row_blocks, hidden_chunks); the hidden axis is the reduction axis.
    acc_ref is a (bn, Dout) f32 VMEM accumulator living across the hidden
    chunks of one row block.
    """
    k = pl.program_id(1)

    @pl.when(k == 0)
    def _init():
        acc_ref[...] = jnp.zeros_like(acc_ref)

    # fc1 for this hidden chunk (f32 MXU accumulation), bias + ReLU in f32.
    h = jnp.dot(x_ref[...], w1_ref[...], preferred_element_type=jnp.float32)
    h = jnp.maximum(h + b1_ref[...], 0.0)

    # Partial fc2: this hidden chunk's contribution to every output column.
    acc_ref[...] += jnp.dot(h.astype(w2_ref.dtype), w2_ref[...],
                            preferred_element_type=jnp.float32)

    @pl.when(k == pl.num_programs(1) - 1)
    def _finalize():
        o_ref[...] = (acc_ref[...] + b2_ref[...]).astype(o_ref.dtype)


# --------------------------------------------------------------------------- config

def _tile_config():
    """Per-TPU-generation (block_rows, block_hidden, vmem_limit_bytes)."""
    try:
        kind = jax.devices()[0].device_kind.lower()
    except Exception:
        kind = ""
    if "v7" in kind:      # 2 TC/chip, only 64 MiB VMEM per TC -> budget per core
        return 256, 512, 48 * 2**20
    if "v6" in kind:      # 256x256 MXU, 128 MiB VMEM -> big tiles, raised limit
        return 512, 512, 100 * 2**20
    if "v5" in kind:      # 128-wide MXU, tighter store slots -> 128/256 tiles
        return 256, 256, 100 * 2**20
    return 256, 256, 48 * 2**20   # conservative default, fits every generation


# --------------------------------------------------------------------------- wrapper

def pallas_ffn(x, w1, b1, w2, b2, *, block_rows=None, block_hidden=None,
               vmem_limit_bytes=None, mxu_dtype=jnp.bfloat16):
    """FFN forward.  x: (..., Din) -> (..., Dout).

    w1: (Din, Dh), b1: (Dh,), w2: (Dh, Dout), b2: (Dout,).
    Matmuls run with `mxu_dtype` inputs (bf16 by default) and f32 accumulation;
    pass mxu_dtype=None for a full-f32 matmul path.
    """
    orig_shape = x.shape
    din, dh, dout = orig_shape[-1], w1.shape[1], w2.shape[1]
    out_dtype = x.dtype

    cfg_rows, cfg_hidden, cfg_vmem = _tile_config()
    block_rows = block_rows or cfg_rows          # must be a multiple of 8
    block_hidden = block_hidden or cfg_hidden    # must be a multiple of 128
    vmem_limit_bytes = vmem_limit_bytes or cfg_vmem

    x2 = x.reshape(-1, din)
    n = x2.shape[0]

    # bf16 MXU path (also halves x / W HBM bytes); biases stay f32.
    if mxu_dtype is not None:
        x2 = x2.astype(mxu_dtype)
        w1 = w1.astype(mxu_dtype)
        w2 = w2.astype(mxu_dtype)
    b1 = b1.astype(jnp.float32)
    b2 = b2.astype(jnp.float32)

    # ---- row tiling: no activation padding; ragged last block is masked ----
    bn = n if n <= block_rows else block_rows
    if bn < n:
        assert bn % 8 == 0, "block_rows must be sublane (8) aligned"
    grid_rows = pl.cdiv(n, bn)

    # ---- hidden tiling: zero-pad weights so tk_h divides Dh exactly --------
    if dh <= block_hidden:
        tk_h, dh_p = dh, dh
    else:
        tk_h = block_hidden
        assert tk_h % 128 == 0, "hidden tile must be lane (128) aligned"
        dh_p = pl.cdiv(dh, tk_h) * tk_h
    grid_h = dh_p // tk_h

    # ---- lane-dense output: pad Dout up to a multiple of 128 ---------------
    dout_p = pl.cdiv(dout, 128) * 128

    # Zero padding is exact: padded W1 cols / b1 -> relu(0)=0; padded W2 rows
    # multiply those zeros; padded W2 cols / b2 only feed sliced-off columns.
    if dh_p != dh:
        w1 = jnp.pad(w1, ((0, 0), (0, dh_p - dh)))
        b1 = jnp.pad(b1, ((0, dh_p - dh),))
    if dh_p != dh or dout_p != dout:
        w2 = jnp.pad(w2, ((0, dh_p - dh), (0, dout_p - dout)))
    if dout_p != dout:
        b2 = jnp.pad(b2, ((0, dout_p - dout),))

    b1_2 = b1.reshape(1, dh_p)
    b2_2 = b2.reshape(1, dout_p)

    flops = 2 * n * din * dh_p + 2 * n * dh_p * dout_p
    bytes_accessed = (
        x2.size * x2.dtype.itemsize
        + w1.size * w1.dtype.itemsize + b1_2.size * b1_2.dtype.itemsize
        + w2.size * w2.dtype.itemsize + b2_2.size * b2_2.dtype.itemsize
        + n * dout_p * x.dtype.itemsize)

    out = pl.pallas_call(
        _ffn_kernel,
        out_shape=jax.ShapeDtypeStruct((n, dout_p), out_dtype),
        grid=(grid_rows, grid_h),
        in_specs=[
            pl.BlockSpec((bn, din),      lambda i, k: (i, 0)),   # x row block
            pl.BlockSpec((din, tk_h),    lambda i, k: (0, k)),   # W1 hidden chunk
            pl.BlockSpec((1, tk_h),      lambda i, k: (0, k)),   # b1 hidden chunk
            pl.BlockSpec((tk_h, dout_p), lambda i, k: (k, 0)),   # W2 hidden chunk
            pl.BlockSpec((1, dout_p),    lambda i, k: (0, 0)),   # b2 (grid const)
        ],
        out_specs=pl.BlockSpec((bn, dout_p), lambda i, k: (i, 0)),
        scratch_shapes=[pltpu.VMEM((bn, dout_p), jnp.float32)],
        compiler_params=pltpu.CompilerParams(
            dimension_semantics=("parallel", "arbitrary"),
            vmem_limit_bytes=vmem_limit_bytes),
        cost_estimate=pl.CostEstimate(
            flops=flops, transcendentals=0, bytes_accessed=bytes_accessed),
    )(x2, w1, b1_2, w2, b2_2)

    if dout_p != dout:
        out = out[:, :dout]
    return out.reshape(orig_shape[:-1] + (dout,))


# --------------------------------------------------------------------------- params

def init_ffn_params(key, input_size, hidden_size, output_size, scale=0.05):
    k1, k2 = jax.random.split(key, 2)
    return dict(
        w1=jax.random.normal(k1, (input_size, hidden_size), jnp.float32) * scale,
        b1=jnp.zeros((hidden_size,), jnp.float32),
        w2=jax.random.normal(k2, (hidden_size, output_size), jnp.float32) * scale,
        b2=jnp.zeros((output_size,), jnp.float32),
    )


def ffn_forward(x, params):
    return pallas_ffn(x, params["w1"], params["b1"], params["w2"], params["b2"])


def _ref_ffn(x, p):
    return jnp.maximum(x @ p["w1"] + p["b1"], 0.0) @ p["w2"] + p["b2"]


# --------------------------------------------------------------------------- main

if __name__ == "__main__":
    key = jax.random.PRNGKey(0)
    k_x, k_p, k_x2, k_p2 = jax.random.split(key, 4)

    # ---- config 1: toy sizes from the module spec (single-block fast path) --
    INPUT_SIZE, HIDDEN_SIZE, OUTPUT_SIZE = 32, 64, 32
    B, S = 2, 8

    x = jax.random.normal(k_x, (B, S, INPUT_SIZE), jnp.float32)
    params = init_ffn_params(k_p, INPUT_SIZE, HIDDEN_SIZE, OUTPUT_SIZE)

    out = jax.block_until_ready(jax.jit(ffn_forward)(x, params))
    ref = _ref_ffn(x, params)
    assert out.shape == (B, S, OUTPUT_SIZE), out.shape
    assert jnp.all(jnp.isfinite(out))
    # bf16 MXU inputs with f32 accumulation -> loosened tolerance vs f32 ref.
    assert jnp.allclose(out, ref, atol=3e-2, rtol=3e-2), \
        float(jnp.abs(out - ref).max())

    # ---- config 2: exercise the tiled path (ragged row blocks, multiple
    #      hidden chunks with zero-padded tail, lane-padded Dout) -------------
    DIN2, DH2, DOUT2 = 48, 320, 80
    x_b = jax.random.normal(k_x2, (3, 40, DIN2), jnp.float32)   # n = 120 rows
    p2 = init_ffn_params(k_p2, DIN2, DH2, DOUT2)

    fwd2 = jax.jit(lambda xx, pp: pallas_ffn(
        xx, pp["w1"], pp["b1"], pp["w2"], pp["b2"],
        block_rows=64, block_hidden=128))
    out2 = jax.block_until_ready(fwd2(x_b, p2))
    ref2 = _ref_ffn(x_b, p2)
    assert out2.shape == (3, 40, DOUT2), out2.shape
    assert jnp.all(jnp.isfinite(out2))
    assert jnp.allclose(out2, ref2, atol=3e-2, rtol=3e-2), \
        float(jnp.abs(out2 - ref2).max())

    print("KERNEL_OK")
</pallas_src>

<mosaic_0001>
module attributes {stable_mosaic.version = 11 : i64} {
  func.func @_ffn_kernel(%arg0: i32, %arg1: i32, %arg2: memref<16x32xbf16, #tpu.memory_space<vmem>>, %arg3: memref<32x64xbf16, #tpu.memory_space<vmem>>, %arg4: memref<1x64xf32, #tpu.memory_space<vmem>>, %arg5: memref<64x128xbf16, #tpu.memory_space<vmem>>, %arg6: memref<1x128xf32, #tpu.memory_space<vmem>>, %arg7: memref<16x128xf32, #tpu.memory_space<vmem>>, %arg8: memref<16x128xf32, #tpu.memory_space<vmem>>) attributes {dimension_semantics = [#tpu.dimension_semantics<parallel>, #tpu.dimension_semantics<arbitrary>], iteration_bounds = array<i64: 1, 1>, scalar_prefetch = 0 : i64, scratch_operands = 1 : i64, tpu.core_type = #tpu.core_type<tc>, window_params = [{transform_indices = @transform_0, window_bounds = array<i64: 16, 32>}, {transform_indices = @transform_1, window_bounds = array<i64: 32, 64>}, {transform_indices = @transform_2, window_bounds = array<i64: 1, 64>}, {transform_indices = @transform_3, window_bounds = array<i64: 64, 128>}, {pipeline_mode = #tpu.pipeline_mode<synchronous>, transform_indices = @transform_4, window_bounds = array<i64: 1, 128>}, {transform_indices = @transform_5, window_bounds = array<i64: 16, 128>}]} {
    %c0_i32 = arith.constant 0 : i32
    %0 = arith.cmpi eq, %arg1, %c0_i32 : i32
    %1 = arith.extui %0 : i1 to i32
    %c0_i32_0 = arith.constant 0 : i32
    %2 = arith.cmpi ne, %1, %c0_i32_0 : i32
    scf.if %2 {
      %cst_16 = arith.constant 0.000000e+00 : f32
      %20 = vector.broadcast %cst_16 : f32 to vector<16x128xf32>
      %c0_17 = arith.constant 0 : index
      %c0_18 = arith.constant 0 : index
      %21 = vector.load %arg8[%c0_17, %c0_18] : memref<16x128xf32, #tpu.memory_space<vmem>>, vector<16x128xf32>
      tpu.vector_store %arg8[%c0_17, %c0_18], %20 {strides = array<i32>} : memref<16x128xf32, #tpu.memory_space<vmem>>, vector<16x128xf32>,
    } else {
    }
    %c0 = arith.constant 0 : index
    %c0_1 = arith.constant 0 : index
    %3 = vector.load %arg2[%c0, %c0_1] : memref<16x32xbf16, #tpu.memory_space<vmem>>, vector<16x32xbf16>
    %c0_2 = arith.constant 0 : index
    %c0_3 = arith.constant 0 : index
    %4 = vector.load %arg3[%c0_2, %c0_3] : memref<32x64xbf16, #tpu.memory_space<vmem>>, vector<32x64xbf16>
    %cst = arith.constant dense<0.000000e+00> : vector<16x64xf32>
    %5 = tpu.matmul %3, %4, %cst {dimension_numbers = #tpu.dot_dimension_numbers<[1], [0], [0], [1], [0, 0, 1, 1], [], []>} : vector<16x32xbf16>, vector<32x64xbf16>, vector<16x64xf32> -> vector<16x64xf32>
    %c0_4 = arith.constant 0 : index
    %c0_5 = arith.constant 0 : index
    %6 = vector.load %arg4[%c0_4, %c0_5] : memref<1x64xf32, #tpu.memory_space<vmem>>, vector<1x64xf32>
    %7 = vector.broadcast %6 : vector<1x64xf32> to vector<16x64xf32>
    %8 = arith.addf %5, %7 : vector<16x64xf32>
    %cst_6 = arith.constant 0.000000e+00 : f32
    %9 = vector.broadcast %cst_6 : f32 to vector<16x64xf32>
    %10 = arith.maximumf %8, %9 : vector<16x64xf32>
    %c0_7 = arith.constant 0 : index
    %c0_8 = arith.constant 0 : index
    %11 = vector.load %arg8[%c0_7, %c0_8] : memref<16x128xf32, #tpu.memory_space<vmem>>, vector<16x128xf32>
    %12 = arith.truncf %10 : vector<16x64xf32> to vector<16x64xbf16>
    %c0_9 = arith.constant 0 : index
    %c0_10 = arith.constant 0 : index
    %13 = vector.load %arg5[%c0_9, %c0_10] : memref<64x128xbf16, #tpu.memory_space<vmem>>, vector<64x128xbf16>
    %cst_11 = arith.constant dense<0.000000e+00> : vector<16x128xf32>
    %14 = tpu.matmul %12, %13, %cst_11 {dimension_numbers = #tpu.dot_dimension_numbers<[1], [0], [0], [1], [0, 0, 1, 1], [], []>} : vector<16x64xbf16>, vector<64x128xbf16>, vector<16x128xf32> -> vector<16x128xf32>
    %15 = arith.addf %11, %14 : vector<16x128xf32>
    %c0_12 = arith.constant 0 : index
    %c0_13 = arith.constant 0 : index
    %16 = vector.load %arg8[%c0_12, %c0_13] : memref<16x128xf32, #tpu.memory_space<vmem>>, vector<16x128xf32>
    tpu.vector_store %arg8[%c0_12, %c0_13], %15 {strides = array<i32>} : memref<16x128xf32, #tpu.memory_space<vmem>>, vector<16x128xf32>,
    %c0_i32_14 = arith.constant 0 : i32
    %17 = arith.cmpi eq, %arg1, %c0_i32_14 : i32
    %18 = arith.extui %17 : i1 to i32
    %c0_i32_15 = arith.constant 0 : i32
    %19 = arith.cmpi ne, %18, %c0_i32_15 : i32
    scf.if %19 {
      %c0_16 = arith.constant 0 : index
      %c0_17 = arith.constant 0 : index
      %20 = vector.load %arg8[%c0_16, %c0_17] : memref<16x128xf32, #tpu.memory_space<vmem>>, vector<16x128xf32>
      %c0_18 = arith.constant 0 : index
      %c0_19 = arith.constant 0 : index
      %21 = vector.load %arg6[%c0_18, %c0_19] : memref<1x128xf32, #tpu.memory_space<vmem>>, vector<1x128xf32>
      %22 = vector.broadcast %21 : vector<1x128xf32> to vector<16x128xf32>
      %23 = arith.addf %20, %22 : vector<16x128xf32>
      %c0_20 = arith.constant 0 : index
      %c0_21 = arith.constant 0 : index
      %24 = vector.load %arg7[%c0_20, %c0_21] : memref<16x128xf32, #tpu.memory_space<vmem>>, vector<16x128xf32>
      tpu.vector_store %arg7[%c0_20, %c0_21], %23 {strides = array<i32>} : memref<16x128xf32, #tpu.memory_space<vmem>>, vector<16x128xf32>,
    } else {
    }
    return
  }
  func.func @transform_0(%arg0: i32, %arg1: i32) -> (i32, i32) {
    %c0_i32 = arith.constant 0 : i32
    %c0_i32_0 = arith.constant 0 : i32
    return %arg0, %c0_i32 : i32, i32
  }
  func.func @transform_1(%arg0: i32, %arg1: i32) -> (i32, i32) {
    %c0_i32 = arith.constant 0 : i32
    %c0_i32_0 = arith.constant 0 : i32
    return %c0_i32, %arg1 : i32, i32
  }
  func.func @transform_2(%arg0: i32, %arg1: i32) -> (i32, i32) {
    %c0_i32 = arith.constant 0 : i32
    %c0_i32_0 = arith.constant 0 : i32
    return %c0_i32, %arg1 : i32, i32
  }
  func.func @transform_3(%arg0: i32, %arg1: i32) -> (i32, i32) {
    %c0_i32 = arith.constant 0 : i32
    %c0_i32_0 = arith.constant 0 : i32
    return %arg1, %c0_i32 : i32, i32
  }
  func.func @transform_4(%arg0: i32, %arg1: i32) -> (i32, i32) {
    %c0_i32 = arith.constant 0 : i32
    %c0_i32_0 = arith.constant 0 : i32
    %c0_i32_1 = arith.constant 0 : i32
    return %c0_i32, %c0_i32_0 : i32, i32
  }
  func.func @transform_5(%arg0: i32, %arg1: i32) -> (i32, i32) {
    %c0_i32 = arith.constant 0 : i32
    %c0_i32_0 = arith.constant 0 : i32
    return %arg0, %c0_i32 : i32, i32
  }
}

</mosaic_0001>

<bundles_post_ra>
// kernel: ffn_forward.1
= control target key start
LH: loop header
LB: loop body
LE: loop exit
PB: predicated region body
PF: predicated region fallthrough
CT: control target
= control target key end

     0   :  { %v256_v0 = vmov 0.0   ;;  %vm257_vm0 = vmmov 0   ;;  %vm57_vm1 = vcmask 261120   ;;  %vm139_vm2 = vcmask 523264   ;;  %s321_s1 = inlined_call_operand.vmem [shape: bf16[32,64], index: 1, kind: input, shape index: {}]   ;;  %s322_s3 = inlined_call_operand.vmem [shape: bf16[64,128], index: 3, kind: input, shape index: {}]   ;;  %s323_s0 = inlined_call_operand.vmem [shape: bf16[16,32], index: 0, kind: input, shape index: {}]   ;;  %s324_s2 = inlined_call_operand.vmem [shape: f32[1,64], index: 2, kind: input, shape index: {}]   ;;  %s325_s4 = inlined_call_operand.vmem [shape: f32[1,128], index: 4, kind: input, shape index: {}]   ;;  %s326_s5 = inlined_call_operand.vmem [shape: f32[16,128], index: 5, kind: output, shape index: {}]  }
   0x1   :  { %227 = vmatprep.subr.bf16.mxu0 %v256_v0  ;;  %v249_v1 = vld [vmem:[%s321_s1] sm:$0xff]   ;;  %231 = vmatprep.mubr.msk.bf16.mxu0 %vm257_vm0, %v256_v0  ;;  %v250_v2 = vld [vmem:[%s321_s1 + $0x8] sm:$0xff]   ;;  %v254_v6 = vld [vmem:[%s322_s3 + $0x10] sm:$0xff]  }
   0x2   :  { %235 = vmatprep.subr.bf16.mxu1 %v256_v0  ;;  %243 = vmatprep.mubr.msk.bf16.mxu1 %vm257_vm0, %v256_v0  ;;  %v252_v3 = vld [vmem:[%s322_s3] sm:$0xff]   ;;  %v253_v5 = vld [vmem:[%s322_s3 + $0x8] sm:$0xff]   ;;  %v255_v7 = vld [vmem:[%s322_s3 + $0x18] sm:$0xff]  }
   0x3   :  { %228 = vmatpush3.bf16.msra.mxu0 %v249_v1  ;;  %v251_v4 = vld [vmem:[%s323_s0] sm:$0xff]   ;;  %236 = vmatpush3.bf16.msra.mxu1 %v252_v3 }
   0x4   :  { %229 = vmatprep.subr.bf16.mxu0 %v256_v0  ;;  %237 = vmatprep.subr.bf16.mxu1 %v256_v0  ;;  %v208_v8 = vld [vmem:[%s324_s2] ss:$0 sm:$0xff] }
   0x5   :  { %v218_v18 = vld [vmem:[%s325_s4] ss:$0 sm:$0xff] }
   0x7   :  { %230 = vmatpush3.bf16.msra.mxu0 %v250_v2  ;;  %238 = vmatpush3.bf16.msra.mxu1 %v253_v5 }
   0x8   :  { %239 = vmatprep.subr.bf16.mxu1 %v256_v0 }
   0xa   :  { %232 = vmatmul.mubr.msk.bf16.vlgmr.msra.gmra.mrb[0].mxu0 %vm57_vm1, %v251_v4 }
   0xb   :  { %240 = vmatpush3.bf16.msra.mxu1 %v254_v6 }
   0xc   :  { %241 = vmatprep.subr.bf16.mxu1 %v256_v0 }
   0xf   :  { %242 = vmatpush3.bf16.msra.mxu1 %v255_v7 }
  0xdd   :  { %v95_v9 = vpop.f32.mrb[0].mxu0 }
  0xde   :  { %v96_v10 = vadd.f32 %v208_v8, %v95_v9  ;;  %v233_v11 = vpop.f32.mrb[1].mxu0 }
  0xdf   :  { %v98_v12 = vpop.f32.mrb[2].mxu0 }
  0xe0   :  { %v99_v13 = vadd.f32 %v208_v8, %v98_v12  ;;  %v234_v14 = vpop.f32.mrb[3].mxu0  ;;  %v102_v15 = vmax.f32 %v96_v10, 0.0 }
  0xe2   :  { %v103_v16 = vmax.f32 %v99_v13, 0.0 }
  0xe4   :  { %v106_v17 = vpack.c.bf16 %v103_v16, %v102_v15 }
  0xe6   :  { %244 = vmatmul.mubr.msk.bf16.vlgmr.msra.gmra.mrb[0].mxu1 %vm139_vm2, %v106_v17 }
 0x1b9   :  { %v177_v19 = vpop.f32.mrb[0].mxu1 }
 0x1ba   :  { %v200_v20 = vadd.f32 %v218_v18, %v177_v19  ;;  %v245_v21 = vpop.f32.mrb[1].mxu1 }
 0x1bb   :  { %v180_v22 = vpop.f32.mrb[2].mxu1 }
 0x1bc   :  { %202 = vst [vmem:[%s326_s5] sm:$0xff] %v200_v20  ;;  %v201_v23 = vadd.f32 %v218_v18, %v180_v22  ;;  %v246_v24 = vpop.f32.mrb[3].mxu1 }
 0x1be   :  { %203 = vst [vmem:[%s326_s5 + $0x8] sm:$0xff] %v201_v23 }

</bundles_post_ra>
